<compile_context>
chip_gen: v6e
topology: v6e:2x2x1
jax: 0.10.0
libtpu: 0.0.40
codegen_flags: <defaults>
</compile_context>

<pallas_src>
import jax
import jax.numpy as jnp
from jax.experimental import pallas as pl
from jax.experimental.pallas import tpu as pltpu


# ----------------------------------------------------------------------------
# Pallas kernel: per-tile squared-error partial sums.
# ----------------------------------------------------------------------------
def _silhouette_sq_err_kernel(alpha_ref, ref_ref, out_ref):
    # alpha_ref: (tile_rows, W) f32  -- alpha channel of the rendered silhouette
    # ref_ref:   (tile_rows, W) bf16 -- binary reference silhouette
    # out_ref:   (8, W)         f32  -- per-tile partial sums (lane-dense)
    d = alpha_ref[...] - ref_ref[...].astype(jnp.float32)
    dsq = d * d
    t, w = dsq.shape
    # Pure-VPU partial reduction: fold (tile_rows, W) into (8, W) by adding
    # whole vreg rows together.  The reduce axis is the outer vreg-tile axis
    # (layout-preserving reshape), so no XLU cross-sublane work in the hot loop.
    out_ref[...] = jnp.sum(dsq.reshape(t // 8, 8, w), axis=0)


def silhouette_loss(alpha, image_ref, *, tile_rows=128):
    """loss = sum((alpha - image_ref)**2) as a tiled, mem-bound Pallas reduction.

    alpha:     (H, W) float32 alpha channel of the rendered RGBA silhouette.
    image_ref: (H, W) binary mask (bf16 or f32); upcast to f32 in-kernel.
    """
    h, w = alpha.shape
    assert image_ref.shape == (h, w)
    assert h % 8 == 0, "rows must be a multiple of 8 (f32 sublane tiling)"

    tile_rows = min(tile_rows, h)
    if h % tile_rows != 0 or tile_rows % 8 != 0:
        tile_rows = h                      # fall back to a single resident block
    grid = (h // tile_rows,)

    partials = pl.pallas_call(
        _silhouette_sq_err_kernel,
        out_shape=jax.ShapeDtypeStruct((grid[0] * 8, w), jnp.float32),
        grid_spec=pltpu.PrefetchScalarGridSpec(
            num_scalar_prefetch=0,
            grid=grid,
            in_specs=[
                pl.BlockSpec((tile_rows, w), lambda i: (i, 0)),
                pl.BlockSpec((tile_rows, w), lambda i: (i, 0)),
            ],
            # Every grid step owns its own output block -> no cross-step state,
            # safe to shard the row axis across TensorCores.
            out_specs=pl.BlockSpec((8, w), lambda i: (i, 0)),
        ),
        compiler_params=pltpu.CompilerParams(
            dimension_semantics=("parallel",)),
    )(alpha, image_ref)

    # Tiny (grid*8, W) f32 final reduce -- negligible XLA work.
    return jnp.sum(partials)


# ----------------------------------------------------------------------------
# Camera math (tiny 3x3 algebra) -- kept in plain JAX as glue
# ----------------------------------------------------------------------------
def _normalize(v, eps=1e-5):
    n = jnp.linalg.norm(v, axis=-1, keepdims=True)
    return v / jnp.maximum(n, eps)


def look_at_rotation(camera_position,
                     at=jnp.zeros((1, 3), jnp.float32),
                     up=jnp.array([[0.0, 1.0, 0.0]], jnp.float32)):
    """JAX port of pytorch3d.renderer.look_at_rotation (at=origin, up=+y)."""
    z_axis = _normalize(at - camera_position)
    x_axis = _normalize(jnp.cross(up, z_axis))
    y_axis = _normalize(jnp.cross(z_axis, x_axis))
    is_close = jnp.all(jnp.abs(x_axis) <= 5e-3, axis=1, keepdims=True)
    replacement = _normalize(jnp.cross(y_axis, z_axis))
    x_axis = jnp.where(is_close, replacement, x_axis)
    R = jnp.concatenate(
        [x_axis[:, None, :], y_axis[:, None, :], z_axis[:, None, :]], axis=1)
    return jnp.transpose(R, (0, 2, 1))  # (1, 3, 3)


# ----------------------------------------------------------------------------
# The Model
# ----------------------------------------------------------------------------
class Model:
    def __init__(self, image_ref):
        # buffer: binarized reference silhouette (matches `(image_ref != 0)`).
        # Stored in bf16 (exact for a 0/1 mask) to halve that HBM stream;
        # upcast to f32 inside the kernel.  (int8 would shave another ~64 KiB
        # but is negligible against the ~1 MiB alpha stream.)
        self.image_ref = (image_ref != 0).astype(jnp.bfloat16)
        # nn.Parameter init from the module's __init__
        self.camera_position = jnp.array([3.0, 6.9, 2.5], dtype=jnp.float32)

    def forward(self, rendered_image):
        # R and T exactly as in the PyTorch forward
        R = look_at_rotation(self.camera_position[None, :])            # (1,3,3)
        T = -jnp.matmul(jnp.transpose(R, (0, 2, 1)),
                        self.camera_position[None, :, None])[:, :, 0]   # (1,3)
        del T  # (renderer consumes R, T; see TODO)

        # TODO(synk): PyTorch3D MeshRasterizer + SoftSilhouetteShader (differentiable
        # mesh rasterization) has no clean Pallas equivalent; the rendered RGBA
        # silhouette is supplied as a deterministic synthetic input instead.
        image = rendered_image                                          # (1,H,W,4)

        # Alpha-channel slice in XLA (cheap strided slice), squared-error
        # reduction in the Pallas kernel.
        alpha = image[0, :, :, 3]                                       # (H,W) f32
        loss = silhouette_loss(alpha, self.image_ref)                   # Pallas kernel
        return loss, image


# ----------------------------------------------------------------------------
if __name__ == "__main__":
    key = jax.random.PRNGKey(0)
    k_img, k_ref = jax.random.split(key)

    H = W = 256  # matches the module's RasterizationSettings(image_size=256)

    # Deterministic synthetic "rendered" RGBA silhouette, NHWC.
    image = jax.random.uniform(k_img, (1, H, W, 4), dtype=jnp.float32)
    # Deterministic reference silhouette (binary mask after `!= 0` in __init__).
    image_ref_raw = (jax.random.uniform(k_ref, (H, W)) > 0.5).astype(jnp.float32)

    model = Model(image_ref_raw)
    loss, img = model.forward(image)
    loss, img = jax.block_until_ready((loss, img))

    # Cross-check the Pallas kernel against pure jnp.
    ref_loss = jnp.sum((image[0, :, :, 3] - model.image_ref.astype(jnp.float32)) ** 2)
    assert jnp.allclose(loss, ref_loss, rtol=1e-5, atol=1e-2), (loss, ref_loss)

    print("KERNEL_OK")
</pallas_src>

<mosaic_0001>
module attributes {stable_mosaic.version = 11 : i64} {
  func.func @_silhouette_sq_err_kernel(%arg0: i32, %arg1: memref<128x256xf32, #tpu.memory_space<vmem>>, %arg2: memref<128x256xbf16, #tpu.memory_space<vmem>>, %arg3: memref<8x256xf32, #tpu.memory_space<vmem>>) attributes {dimension_semantics = [#tpu.dimension_semantics<parallel>], iteration_bounds = array<i64: 2>, scalar_prefetch = 0 : i64, scratch_operands = 0 : i64, tpu.core_type = #tpu.core_type<tc>, window_params = [{transform_indices = @transform_0, window_bounds = array<i64: 128, 256>}, {transform_indices = @transform_1, window_bounds = array<i64: 128, 256>}, {transform_indices = @transform_2, window_bounds = array<i64: 8, 256>}]} {
    %c0 = arith.constant 0 : index
    %c0_0 = arith.constant 0 : index
    %0 = vector.load %arg1[%c0, %c0_0] : memref<128x256xf32, #tpu.memory_space<vmem>>, vector<128x256xf32>
    %c0_1 = arith.constant 0 : index
    %c0_2 = arith.constant 0 : index
    %1 = vector.load %arg2[%c0_1, %c0_2] : memref<128x256xbf16, #tpu.memory_space<vmem>>, vector<128x256xbf16>
    %2 = arith.extf %1 : vector<128x256xbf16> to vector<128x256xf32>
    %3 = arith.subf %0, %2 : vector<128x256xf32>
    %4 = arith.mulf %3, %3 : vector<128x256xf32>
    %5 = vector.shape_cast %4 : vector<128x256xf32> to vector<16x8x256xf32>
    %cst = arith.constant dense<0.000000e+00> : vector<8x256xf32>
    %6 = vector.multi_reduction <add>, %5, %cst [0] : vector<16x8x256xf32> to vector<8x256xf32>
    %c0_3 = arith.constant 0 : index
    %c0_4 = arith.constant 0 : index
    %7 = vector.load %arg3[%c0_3, %c0_4] : memref<8x256xf32, #tpu.memory_space<vmem>>, vector<8x256xf32>
    tpu.vector_store %arg3[%c0_3, %c0_4], %6 {strides = array<i32>} : memref<8x256xf32, #tpu.memory_space<vmem>>, vector<8x256xf32>,
    return
  }
  func.func @transform_0(%arg0: i32) -> (i32, i32) {
    %c0_i32 = arith.constant 0 : i32
    %c0_i32_0 = arith.constant 0 : i32
    return %arg0, %c0_i32 : i32, i32
  }
  func.func @transform_1(%arg0: i32) -> (i32, i32) {
    %c0_i32 = arith.constant 0 : i32
    %c0_i32_0 = arith.constant 0 : i32
    return %arg0, %c0_i32 : i32, i32
  }
  func.func @transform_2(%arg0: i32) -> (i32, i32) {
    %c0_i32 = arith.constant 0 : i32
    %c0_i32_0 = arith.constant 0 : i32
    return %arg0, %c0_i32 : i32, i32
  }
}

</mosaic_0001>

<bundles_post_ra>
// kernel: tpu_custom_call.1
= control target key start
LH: loop header
LB: loop body
LE: loop exit
PB: predicated region body
PF: predicated region fallthrough
CT: control target
= control target key end

     0   :  { %7 = vsyncpa [#allocation3], 0  ;;  %s1028_s0 = inlined_call_operand.hbm [shape: f32[256,256], index: 0, kind: input, shape index: {}]   ;;  %s1029_s1 = inlined_call_operand.hbm [shape: bf16[256,256], index: 1, kind: input, shape index: {}]   ;;  %s1030_s2 = inlined_call_operand.hbm [shape: f32[16,256], index: 2, kind: output, shape index: {}]  }
   0x1   :  { %9 = vsyncpa [#allocation3 + $0x1], 0 }
   0x2   :  { %10 = vsyncpa [#allocation6], 0 }
   0x3   :  { %12 = vsyncpa [#allocation6 + $0x1], 0 }
   0x4   :  { %13 = vsyncpa [#allocation4], 0 }
   0x5   :  { %15 = vsyncpa [#allocation4 + $0x1], 0  ;;  %s718_s9 = smov 0   ;;  %s720_s10 = smov 0  }
   0x6   :  { %s722_s11 = smov 0   ;;  %s724_s12 = smov 0  }
   0x7 LB: > { %s739_s13 = sadd.s32 4294967295, %s694_s12   ;;  %s490_s14 = sadd.s32 4294967294, %s694_s12   ;;  %s694_s12 = sphi %s724_s12, %s1046_s12   ;;  %s690_s11 = sphi %s722_s11, %s1045_s11   ;;  %s686_s10 = sphi %s720_s10, %s1044_s10   ;;  %s682_s9 = sphi %s718_s9, %s1043_s9  }
   0x8   : > { %s743_s15 = sadd.s32 1, %s694_s12   ;;  %s28_s16 = sadd.s32 1, %s690_s11 }
   0x9   : > { %s25_s17 = ssub.s32 %s694_s12, %s743_s15  ;;  %p35_p0 = scmp.ne.s32.totalorder %s690_s11, %s686_s10 }
   0xa   : > { %p26_p1 = scmp.eq.s32.totalorder %s25_s17, 0  ;;  %p36_p2 = scmp.eq.s32.totalorder %s694_s12, 0 }
   0xb   : > { %p41_p3 = scmp.ne.s32.totalorder %s686_s10, %s682_s9  ;;  %p42_p4 = scmp.eq.s32.totalorder %s739_s13, 0 }
   0xc   : > { %s755_s18 = scalar_select %p26_p1, %s690_s11, %s28_s16  }
   0xd   : > { %p757_p5 = por %p36_p2, %p35_p0  ;;  %p761_p6 = por %p42_p4, %p41_p3 }
   0xe   : > { %p91_p7 = scmp.eq.s32.totalorder %s739_s13, 1  ;;  %p97_p8 = scmp.eq.s32.totalorder %s490_s14, 1 }
   0xf   : > { %s1034_s20 = scalar_select %p761_p6, 1, 0 }
  0x10   : > { %p532_p10 = scmp.lt.s32.totalorder %s694_s12, 2  ;;  %p768_p11 = por %p91_p7, %p35_p0 }
  0x11   : > { %p772_p12 = por %p97_p8, %p41_p3  ;;  %s777_s23 = sand.u32 1, %s690_s11  }
  0x12   : > { %s1035_s21 = scalar_select %p768_p11, 1, 0 }
  0x13   : > { %s1036_s22 = scalar_select %p772_p12, 1, 0 }
  0x14   : > { %s511_s24 = sshll.u32 %s694_s12, 12  ;;  %s493_s25 = sshll.u32 %s777_s23, 8 }
  0x15   : > { %s784_s28 = scalar_lea.hbm %s1028_s0, %s511_s24  ;;  %s121_s29 = scalar_lea.vmem [#allocation2], %s493_s25 }
  0x16   : > { %s129_s30 = sshll.u32 %s121_s29, 4  ;;  %p788_p13 = pnand %p532_p10, %p757_p5  ;;  %s792_s30 = int_to_ptr.vmem [resolvable:$true] %s129_s30 }
  0x17   : > { %s118_s4 = scalar_lea.sflag [#allocation3], %s777_s23  ;;  %s570_s5 = scalar_lea.hbm %s784_s28, 4096 }
  0x18   : > { %p571_p0 = scmp.ne.s32.totalorder %s784_s28, %s570_s5  ;;  %p572_p1 = pneg %p788_p13 }
  0x19   : > { %s575_s8 = scalar_lea.hbm %s1028_s0, 8192  ;;  %p576_p4 = scmp.lt.s32.totalorder %s784_s28, %s1028_s0 }
  0x1a   : > { %p573_p2 = pnand %p572_p1, %p571_p0  ;;  %p577_p5 = scmp.lt.s32.totalorder %s575_s8, %s570_s5 }
  0x1c   : > { %p574_p3 = pneg %p573_p2  ;;  %p578_p7 = por %p577_p5, %p576_p4 }
  0x1e   : > { %p579_p8 = pnand %p578_p7, %p574_p3 }
  0x20   : > { %582 = shalt.err (!%p579_p8)
}
  0x21   : > { %s583_s17 = scalar_lea.vmem %s792_s30, 4096  ;;  %s696_s19 = smov [#allocation2]  }
  0x22   : > { %p584_p10 = scmp.ne.s32.totalorder %s792_s30, %s583_s17  ;;  %s588_s24 = sshll.u32 %s696_s19, 4  ;;  %s589_s24 = int_to_ptr.vmem [resolvable:$false] %s588_s24 }
  0x23   : > { %s590_s25 = scalar_lea.vmem %s589_s24, 8192  ;;  %p591_p9 = scmp.lt.s32.totalorder %s792_s30, %s589_s24 }
  0x24   : > { %p586_p0 = pnand %p584_p10, %p572_p1  ;;  %p592_p12 = scmp.lt.s32.totalorder %s590_s25, %s583_s17 }
  0x26   : > { %p587_p2 = pneg %p586_p0  ;;  %p593_p11 = por %p592_p12, %p591_p9 }
  0x28   : > { %p594_p4 = pnand %p593_p11, %p587_p2 }
  0x2a   : > { %597 = shalt.err (!%p594_p4)
}
  0x2b   : > { %s697_s26 = smov 256   ;;  %s698_s27 = smov 16  }
  0x2c   : > { %524 = dma.hbm_to_vmem [thread:$0]  (!%p788_p13), %s784_s28, 4096, %s792_s30, %s118_s4, %s697_s26, %s697_s26, %s698_s27  }
  0x2d   : > { %p501_p3 = scmp.ge.s32.totalorder %s694_s12, 1  ;;  %p159_p5 = scmp.lt.s32.totalorder %s694_s12, 3 }
  0x2e   : > { %s497_s29 = sshll.u32 %s777_s23, 7  ;;  %s513_s6 = sshll.u32 %s694_s12, 11 }
  0x2f   : > { %p824_p9 = pnand %p501_p3, %p159_p5  ;;  %s143_s7 = scalar_lea.vmem [#allocation5], %s497_s29 }
  0x30   : > { %s151_s8 = sshll.u32 %s143_s7, 4  ;;  %s832_s17 = scalar_lea.hbm %s1029_s1, %s513_s6  ;;  %s834_s8 = int_to_ptr.vmem [resolvable:$true] %s151_s8 }
  0x31   : > { %s140_s28 = scalar_lea.sflag [#allocation6], %s777_s23  ;;  %s598_s30 = scalar_lea.hbm %s832_s17, 2048 }
  0x32   : > { %p599_p11 = scmp.ne.s32.totalorder %s832_s17, %s598_s30  ;;  %s603_s24 = scalar_lea.hbm %s1029_s1, 4096 }
  0x33   : > { %p604_p8 = scmp.lt.s32.totalorder %s832_s17, %s1029_s1  ;;  %p605_p10 = scmp.lt.s32.totalorder %s603_s24, %s598_s30 }
  0x34   : > { %p601_p12 = pnand %p599_p11, %p572_p1 }
  0x35   : > { %p606_p0 = por %p605_p10, %p604_p8 }
  0x36   : > { %p602_p7 = pneg %p601_p12 }
  0x38   : > { %p607_p2 = pnand %p606_p0, %p602_p7 }
  0x3a   : > { %610 = shalt.err (!%p607_p2)
}
  0x3b   : > { %s611_s27 = scalar_lea.vmem %s834_s8, 2048  ;;  %s699_s29 = smov [#allocation5]  }
  0x3c   : > { %p612_p4 = scmp.ne.s32.totalorder %s834_s8, %s611_s27  ;;  %s616_s6 = sshll.u32 %s699_s29, 4  ;;  %s617_s6 = int_to_ptr.vmem [resolvable:$false] %s616_s6 }
  0x3d   : > { %s618_s7 = scalar_lea.vmem %s617_s6, 4096  ;;  %p619_p11 = scmp.lt.s32.totalorder %s834_s8, %s617_s6 }
  0x3e   : > { %p614_p3 = pnand %p612_p4, %p572_p1  ;;  %p620_p12 = scmp.lt.s32.totalorder %s618_s7, %s611_s27 }
  0x40   : > { %p615_p5 = pneg %p614_p3  ;;  %p621_p6 = por %p620_p12, %p619_p11 }
  0x42   : > { %p622_p8 = pnand %p621_p6, %p615_p5 }
  0x44   : > { %625 = shalt.err (!%p622_p8)
}
  0x45   : > { %s700_s14 = smov 128   ;;  %s701_s16 = smov 8  }
  0x46   : > { %527 = dma.hbm_to_vmem [thread:$0]  (!%p788_p13), %s832_s17, 2048, %s834_s8, %s140_s28, %s700_s14, %s700_s14, %s701_s16  }
  0x47   : > { %163 = sbr.rel (%p824_p9) target bundleno = 139 (0x8b), region = 28  ;;  %s864_s30 = sand.u32 (!%p824_p9), 1, %s686_s10  }
  0x48   : > { %s502_s4 = sshll.u32 (!%p824_p9), %s864_s30, 8  ;;  %s166_s19 = scalar_lea.sflag (!%p824_p9), [#allocation3], %s864_s30 }
  0x49   : > { %s868_s24 = scalar_lea.vmem (!%p824_p9), [#allocation2], %s502_s4  ;;  %p1039_p6 = scmp.ne.s32.totalorder (!%p824_p9), %s1034_s20, 0 }
  0x4c   : > { %669 = dma.done.wait (%p1039_p6), %s166_s19, 4096  }
  0x4d   : > { %671 = vsyncadd (%p1039_p6), %s166_s19, 4294963200  ;;  %s503_s23 = sshll.u32 %s864_s30, 7  ;;  %s175_s3 = scalar_lea.sflag [#allocation6], %s864_s30 }
  0x4e   : > { %s876_s5 = scalar_lea.vmem [#allocation5], %s503_s23 }
  0x4f   : > { %673 = dma.done.wait (%p1039_p6), %s175_s3, 2048  }
  0x50   : > { %675 = vsyncadd (%p1039_p6), %s175_s3, 4294965248  ;;  %v238_v0 = vld [vmem:[%s876_s5] sm:$0xff]  ;;  %v239_v1 = vld [vmem:[%s876_s5 + $0x8] sm:$0xff]  ;;  %s504_s20 = sshll.u32 %s864_s30, 4  ;;  %s514_s28 = sshll.u32 %s739_s13, 8 }
  0x51   : > { %v885_v2 = vld [vmem:[%s876_s5 + $0x10] sm:$0xff]  ;;  %v254_v3 = vunpack.c.l.bf16 %v238_v0  ;;  %v206_v4 = vld [vmem:[%s868_s24] sm:$0xff]  ;;  %v889_v5 = vld [vmem:[%s876_s5 + $0x18] sm:$0xff]  ;;  %v256_v6 = vunpack.c.l.bf16 %v239_v1  ;;  %v255_v37 = vunpack.c.h.bf16 %v238_v0  ;;  %v257_v38 = vunpack.c.h.bf16 %v239_v1  ;;  %s203_s8 = scalar_lea.vmem [#allocation7], %s504_s20  ;;  %s395_s27 = scalar_lea.hbm %s1030_s2, %s514_s28 }
  0x52   : > { %v208_v7 = vld [vmem:[%s868_s24 + $0x10] sm:$0xff]  ;;  %v258_v8 = vunpack.c.l.bf16 %v885_v2  ;;  %v210_v9 = vld [vmem:[%s868_s24 + $0x20] sm:$0xff]  ;;  %v260_v11 = vunpack.c.l.bf16 %v889_v5  ;;  %v900_v14 = vld [vmem:[%s876_s5 + $0x28] sm:$0xff]  ;;  %v259_v47 = vunpack.c.h.bf16 %v885_v2  ;;  %v261_v55 = vunpack.c.h.bf16 %v889_v5  ;;  %s397_s17 = sshll.u32 %s203_s8, 4  ;;  %s383_s29 = scalar_lea.sflag [#allocation4], %s864_s30  ;;  %s988_s17 = int_to_ptr.vmem [resolvable:$true] %s397_s17 }
  0x53   : > { %v895_v10 = vld [vmem:[%s876_s5 + $0x20] sm:$0xff]  ;;  %v286_v12 = vsub.f32 %v206_v4, %v254_v3  ;;  %v212_v13 = vld [vmem:[%s868_s24 + $0x30] sm:$0xff]  ;;  %v288_v15 = vsub.f32 %v208_v7, %v256_v6  ;;  %v264_v20 = vunpack.c.l.bf16 %v900_v14  ;;  %v910_v24 = vld [vmem:[%s876_s5 + $0x38] sm:$0xff]  ;;  %s626_s6 = scalar_lea.vmem %s988_s17, 256  ;;  %p1040_p1 = scmp.ne.s32.totalorder %s1035_s21, 0 }
  0x54   : > { %v262_v16 = vunpack.c.l.bf16 %v895_v10  ;;  %v290_v17 = vsub.f32 %v210_v9, %v258_v8  ;;  %v214_v18 = vld [vmem:[%s868_s24 + $0x40] sm:$0xff]  ;;  %v905_v19 = vld [vmem:[%s876_s5 + $0x30] sm:$0xff]  ;;  %v292_v21 = vsub.f32 %v212_v13, %v260_v11  ;;  %v268_v31 = vunpack.c.l.bf16 %v910_v24  ;;  %v920_v36 = vld [vmem:[%s876_s5 + $0x48] sm:$0xff]  ;;  %p627_p13 = scmp.ne.s32.totalorder %s988_s17, %s626_s6  ;;  %s702_s7 = smov [#allocation7]  }
  0x55   : > { %v318_v22 = vmul.f32 %v286_v12, %v286_v12  ;;  %v216_v23 = vld [vmem:[%s868_s24 + $0x50] sm:$0xff]  ;;  %v320_v25 = vmul.f32 %v288_v15, %v288_v15  ;;  %v266_v26 = vunpack.c.l.bf16 %v905_v19  ;;  %v218_v29 = vld [vmem:[%s868_s24 + $0x60] sm:$0xff]  ;;  %v207_v43 = vld [vmem:[%s868_s24 + $0x8] sm:$0xff]  ;;  %v272_v48 = vunpack.c.l.bf16 %v920_v36  ;;  %s630_s13 = sshll.u32 %s702_s7, 4  ;;  %s631_s13 = int_to_ptr.vmem [resolvable:$false] %s630_s13 }
  0x56   : > { %v294_v27 = vsub.f32 %v214_v18, %v262_v16  ;;  %v322_v28 = vmul.f32 %v290_v17, %v290_v17  ;;  %v915_v30 = vld [vmem:[%s876_s5 + $0x40] sm:$0xff]  ;;  %v296_v32 = vsub.f32 %v216_v23, %v264_v20  ;;  %v324_v33 = vmul.f32 %v292_v21, %v292_v21  ;;  %v220_v35 = vld [vmem:[%s868_s24 + $0x70] sm:$0xff]  ;;  %v209_v44 = vld [vmem:[%s868_s24 + $0x18] sm:$0xff]  ;;  %p628_p9 = pnand %p627_p13, %p1040_p1  ;;  %s632_s14 = scalar_lea.vmem %s631_s13, 512 }
  0x57   : > { %v350_v34 = vadd.f32 %v320_v25, %v318_v22  ;;  %v270_v39 = vunpack.c.l.bf16 %v915_v30  ;;  %v298_v40 = vsub.f32 %v218_v29, %v266_v26  ;;  %v222_v45 = vld [vmem:[%s868_s24 + $0x80] sm:$0xff]  ;;  %v927_v46 = vld [vmem:[%s876_s5 + $0x50] sm:$0xff]  ;;  %v300_v49 = vsub.f32 %v220_v35, %v268_v31  ;;  %v211_v52 = vld [vmem:[%s868_s24 + $0x28] sm:$0xff]  ;;  %p633_p10 = scmp.lt.s32.totalorder %s988_s17, %s631_s13  ;;  %p634_p0 = scmp.lt.s32.totalorder %s632_s14, %s626_s6 }
  0x58   : > { %v326_v41 = vmul.f32 %v294_v27, %v294_v27  ;;  %v328_v50 = vmul.f32 %v296_v32, %v296_v32  ;;  %v224_v53 = vld [vmem:[%s868_s24 + $0x90] sm:$0xff]  ;;  %v934_v54 = vld [vmem:[%s876_s5 + $0x58] sm:$0xff]  ;;  %v287_v56 = vsub.f32 %v207_v43, %v255_v37  ;;  %v289_v57 = vsub.f32 %v209_v44, %v257_v38  ;;  %v226_v63 = vld [vmem:[%s868_s24 + $0xa0] sm:$0xff]  ;;  %p629_p7 = pneg %p628_p9 }
  0x59   : > { %v351_v42 = vadd.f32 %v350_v34, %v322_v28  ;;  %v274_v58 = vunpack.c.l.bf16 %v927_v46  ;;  %v302_v59 = vsub.f32 %v222_v45, %v270_v39  ;;  %v330_v60 = vmul.f32 %v298_v40, %v298_v40  ;;  %v213_v62 = vld [vmem:[%s868_s24 + $0x38] sm:$0xff]  ;;  %v941_v0 = vld [vmem:[%s876_s5 + $0x60] sm:$0xff]  ;;  %v215_v7 = vld [vmem:[%s868_s24 + $0x48] sm:$0xff]  ;;  %p635_p2 = por %p634_p0, %p633_p10 }
  0x5a   : > { %v263_v1 = vunpack.c.h.bf16 %v895_v10  ;;  %v291_v2 = vsub.f32 %v211_v52, %v259_v47  ;;  %v276_v3 = vunpack.c.l.bf16 %v934_v54  ;;  %v304_v4 = vsub.f32 %v224_v53, %v272_v48  ;;  %v228_v8 = vld [vmem:[%s868_s24 + $0xb0] sm:$0xff]  ;;  %v948_v9 = vld [vmem:[%s876_s5 + $0x68] sm:$0xff]  ;;  %v217_v20 = vld [vmem:[%s868_s24 + $0x58] sm:$0xff] }
  0x5b   : > { %v352_v51 = vadd.f32 %v351_v42, %v324_v33  ;;  %v332_v5 = vmul.f32 %v300_v49, %v300_v49  ;;  %v265_v11 = vunpack.c.h.bf16 %v900_v14  ;;  %v293_v12 = vsub.f32 %v213_v62, %v261_v55  ;;  %v230_v21 = vld [vmem:[%s868_s24 + $0xc0] sm:$0xff]  ;;  %v955_v22 = vld [vmem:[%s876_s5 + $0x70] sm:$0xff]  ;;  %v219_v31 = vld [vmem:[%s868_s24 + $0x68] sm:$0xff]  ;;  %p636_p4 = pnand %p635_p2, %p629_p7 }
  0x5c   : > { %v319_v13 = vmul.f32 %v287_v56, %v287_v56  ;;  %v321_v15 = vmul.f32 %v289_v57, %v289_v57  ;;  %v278_v10 = vunpack.c.l.bf16 %v941_v0  ;;  %v306_v16 = vsub.f32 %v226_v63, %v274_v58  ;;  %v232_v32 = vld [vmem:[%s868_s24 + $0xd0] sm:$0xff]  ;;  %v962_v33 = vld [vmem:[%s876_s5 + $0x78] sm:$0xff]  ;;  %v234_v43 = vld [vmem:[%s868_s24 + $0xe0] sm:$0xff] }
  0x5d   : > { %v353_v61 = vadd.f32 %v352_v51, %v326_v41  ;;  %v334_v17 = vmul.f32 %v302_v59, %v302_v59  ;;  %v267_v23 = vunpack.c.h.bf16 %v905_v19  ;;  %v295_v25 = vsub.f32 %v215_v7, %v263_v1  ;;  %v221_v42 = vld [vmem:[%s868_s24 + $0x78] sm:$0xff]  ;;  %v223_v52 = vld [vmem:[%s868_s24 + $0x88] sm:$0xff]  ;;  %v236_v53 = vld [vmem:[%s868_s24 + $0xf0] sm:$0xff] }
  0x5e   : > { %v323_v26 = vmul.f32 %v291_v2, %v291_v2  ;;  %v280_v14 = vunpack.c.l.bf16 %v948_v9  ;;  %v308_v27 = vsub.f32 %v228_v8, %v276_v3  ;;  %v336_v28 = vmul.f32 %v304_v4, %v304_v4 }
  0x5f   : > { %v354_v6 = vadd.f32 %v353_v61, %v328_v50  ;;  %v269_v34 = vunpack.c.h.bf16 %v910_v24  ;;  %v297_v35 = vsub.f32 %v217_v20, %v265_v11  ;;  %v325_v37 = vmul.f32 %v293_v12, %v293_v12  ;;  %v225_v61 = vld [vmem:[%s868_s24 + $0x98] sm:$0xff] }
  0x60   : > { %v365_v38 = vadd.f32 %v321_v15, %v319_v13  ;;  %v282_v19 = vunpack.c.l.bf16 %v955_v22  ;;  %v310_v39 = vsub.f32 %v230_v21, %v278_v10  ;;  %v338_v40 = vmul.f32 %v306_v16, %v306_v16  ;;  %v229_v15 = vld [vmem:[%s868_s24 + $0xb8] sm:$0xff]  ;;  %v231_v21 = vld [vmem:[%s868_s24 + $0xc8] sm:$0xff] }
  0x61   : > { %v355_v18 = vadd.f32 %v354_v6, %v330_v60  ;;  %v271_v44 = vunpack.c.h.bf16 %v915_v30  ;;  %v299_v45 = vsub.f32 %v219_v31, %v267_v23  ;;  %v327_v47 = vmul.f32 %v295_v25, %v295_v25  ;;  %v227_v6 = vld [vmem:[%s868_s24 + $0xa8] sm:$0xff] }
  0x62   : > { %v366_v48 = vadd.f32 %v365_v38, %v323_v26  ;;  %v284_v24 = vunpack.c.l.bf16 %v962_v33  ;;  %v312_v49 = vsub.f32 %v232_v32, %v280_v14  ;;  %v340_v50 = vmul.f32 %v308_v27, %v308_v27  ;;  %v233_v27 = vld [vmem:[%s868_s24 + $0xd8] sm:$0xff] }
  0x63   : > { %v356_v29 = vadd.f32 %v355_v18, %v332_v5  ;;  %v273_v55 = vunpack.c.h.bf16 %v920_v36  ;;  %v301_v56 = vsub.f32 %v221_v42, %v269_v34  ;;  %v329_v57 = vmul.f32 %v297_v35, %v297_v35  ;;  %v235_v34 = vld [vmem:[%s868_s24 + $0xe8] sm:$0xff] }
  0x64   : > { %v367_v58 = vadd.f32 %v366_v48, %v325_v37  ;;  %v314_v59 = vsub.f32 %v234_v43, %v282_v19  ;;  %v342_v60 = vmul.f32 %v310_v39, %v310_v39  ;;  %v275_v62 = vunpack.c.h.bf16 %v927_v46 }
  0x65   : > { %v357_v41 = vadd.f32 %v356_v29, %v334_v17  ;;  %v303_v63 = vsub.f32 %v223_v52, %v271_v44  ;;  %v331_v1 = vmul.f32 %v299_v45, %v299_v45  ;;  %v316_v3 = vsub.f32 %v236_v53, %v284_v24 }
  0x66   : > { %v368_v2 = vadd.f32 %v367_v58, %v327_v47  ;;  %v344_v4 = vmul.f32 %v312_v49, %v312_v49  ;;  %v277_v36 = vunpack.c.h.bf16 %v934_v54  ;;  %v305_v7 = vsub.f32 %v225_v61, %v273_v55 }
  0x67   : > { %v358_v51 = vadd.f32 %v357_v41, %v336_v28  ;;  %v333_v8 = vmul.f32 %v301_v56, %v301_v56  ;;  %v346_v12 = vmul.f32 %v314_v59, %v314_v59  ;;  %v279_v46 = vunpack.c.h.bf16 %v941_v0 }
  0x68   : > { %v369_v11 = vadd.f32 %v368_v2, %v329_v57  ;;  %v307_v10 = vsub.f32 %v227_v6, %v275_v62  ;;  %v335_v16 = vmul.f32 %v303_v63, %v303_v63  ;;  %v348_v18 = vmul.f32 %v316_v3, %v316_v3 }
  0x69   : > { %v359_v30 = vadd.f32 %v358_v51, %v338_v40  ;;  %v281_v23 = vunpack.c.h.bf16 %v948_v9  ;;  %v309_v54 = vsub.f32 %v229_v15, %v277_v36  ;;  %v337_v25 = vmul.f32 %v305_v7, %v305_v7  ;;  %v237_v9 = vld [vmem:[%s868_s24 + $0xf8] sm:$0xff] }
  0x6a   : > { %v370_v17 = vadd.f32 %v369_v11, %v331_v1  ;;  %v283_v28 = vunpack.c.h.bf16 %v955_v22  ;;  %v311_v29 = vsub.f32 %v231_v21, %v279_v46  ;;  %v339_v0 = vmul.f32 %v307_v10, %v307_v10 }
  0x6b   : > { %v360_v5 = vadd.f32 %v359_v30, %v340_v50  ;;  %v285_v35 = vunpack.c.h.bf16 %v962_v33  ;;  %v313_v37 = vsub.f32 %v233_v27, %v281_v23  ;;  %v341_v38 = vmul.f32 %v309_v54, %v309_v54 }
  0x6c   : > { %v371_v26 = vadd.f32 %v370_v17, %v333_v8  ;;  %v315_v39 = vsub.f32 %v235_v34, %v283_v28  ;;  %v343_v40 = vmul.f32 %v311_v29, %v311_v29 }
  0x6d   : > { %v361_v13 = vadd.f32 %v360_v5, %v342_v60  ;;  %v317_v42 = vsub.f32 %v237_v9, %v285_v35  ;;  %v345_v22 = vmul.f32 %v313_v37, %v313_v37 }
  0x6e   : > { %v372_v31 = vadd.f32 %v371_v26, %v335_v16  ;;  %v347_v44 = vmul.f32 %v315_v39, %v315_v39 }
  0x6f   : > { %v362_v20 = vadd.f32 %v361_v13, %v344_v4  ;;  %v349_v47 = vmul.f32 %v317_v42, %v317_v42 }
  0x70   : > { %v373_v19 = vadd.f32 %v372_v31, %v337_v25 }
  0x71   : > { %v363_v14 = vadd.f32 %v362_v20, %v346_v12 }
  0x72   : > { %v374_v41 = vadd.f32 %v373_v19, %v339_v0 }
  0x73   : > { %v364_v32 = vadd.f32 %v363_v14, %v348_v18 }
  0x74   : > { %v375_v43 = vadd.f32 %v374_v41, %v341_v38 }
  0x75   : > { %380 = vst [vmem:[%s203_s8] sm:$0xff] %v364_v32 }
  0x76   : > { %v376_v45 = vadd.f32 %v375_v43, %v343_v40 }
  0x78   : > { %v377_v48 = vadd.f32 %v376_v45, %v345_v22 }
  0x7a   : > { %v378_v33 = vadd.f32 %v377_v48, %v347_v44 }
  0x7c   : > { %v379_v24 = vadd.f32 %v378_v33, %v349_v47 }
  0x7e   : > { %381 = vst [vmem:[%s203_s8 + $0x8] sm:$0xff] %v379_v24 }
  0x7f   : > { %639 = shalt.err (!%p636_p4)
}
  0x80   : > { %s640_s16 = scalar_lea.hbm %s395_s27, 256  ;;  %s644_s19 = scalar_lea.hbm %s1030_s2, 512 }
  0x81   : > { %p641_p3 = scmp.ne.s32.totalorder %s395_s27, %s640_s16  ;;  %p645_p12 = scmp.lt.s32.totalorder %s395_s27, %s1030_s2 }
  0x82   : > { %p646_p8 = scmp.lt.s32.totalorder %s644_s19, %s640_s16 }
  0x83   : > { %p642_p5 = pnand %p641_p3, %p1040_p1 }
  0x84   : > { %p647_p6 = por %p646_p8, %p645_p12 }
  0x85   : > { %p643_p11 = pneg %p642_p5 }
  0x87   : > { %p648_p13 = pnand %p647_p6, %p643_p11 }
  0x89   : > { %651 = shalt.err (!%p648_p13)
}
  0x8a   : > { %519 = dma.vmem_to_hbm [thread:$0]  (%p1040_p1), %s988_s17, 256, %s395_s27, %s383_s29  }
  0x8b PF: > { %s409_s3 = sand.u32 1, %s682_s9   ;;  %p1041_p9 = scmp.ne.s32.totalorder %s1036_s22, 0 }
  0x8c   : > { %p1042_p7 = scmp.ge.s32.totalorder %s694_s12, 2  ;;  %s410_s5 = scalar_lea.sflag [#allocation4], %s409_s3 }
  0x8e   : > { %p529_p10 = pnand %p1042_p7, %p1041_p9 }
  0x90   : > { %p530_p0 = pneg %p529_p10 }
  0x92   : > { %677 = dma.done.wait (%p530_p0), %s410_s5, 256  }
  0x93   : > { %679 = vsyncadd (%p530_p0), %s410_s5, 4294967040  ;;  %p18_p2 = scmp.ge.s32.totalorder %s743_s15, 4   ;;  %s1043_s9 = smov %s686_s10 }
  0x94   : > { %s1044_s10 = smov %s690_s11  ;;  %s1045_s11 = smov %s755_s18 }
  0x95   : > { %s1046_s12 = smov %s743_s15  ;;  %20 = sbr.rel (!%p18_p2) target bundleno = 7 (0x7), region = 86 }
  0x9a   :  { %415 = vsyncpa [#allocation3], 1 }
  0x9b   :  { %417 = vsyncpa [#allocation3 + $0x1], 1 }
  0x9c   :  { %418 = vsyncpa [#allocation6], 1 }
  0x9d   :  { %420 = vsyncpa [#allocation6 + $0x1], 1 }
  0x9e   :  { %421 = vsyncpa [#allocation4], 1 }
  0x9f   :  { %423 = vsyncpa [#allocation4 + $0x1], 1 }

</bundles_post_ra>
